<compile_context>
chip_gen: v5e
topology: v5e:2x2
jax: 0.10.0
libtpu: 0.0.40
codegen_flags: <defaults>
</compile_context>

<pallas_src>
import jax
import jax.numpy as jnp
from jax.experimental import pallas as pl
from jax.experimental.pallas import tpu as pltpu

PACK = 128              # original 8-wide rows packed into one 1024-lane packed row
D_IN = 8                # in_features of nn.Linear(8, 1, bias=False)
K = PACK * D_IN         # 1024 = contraction length of the packed matmul


def energy_kernel(x_ref, p_ref, o_ref):
    # x_ref: (TP, 1024)  packed features (128 original rows per packed row)
    # p_ref: (1024, 128) block-diagonal weight (VMEM-resident across grid steps)
    # o_ref: (TP, 128)   lane-dense packed energies (row-major flat == (128*TP,))
    o_ref[...] = jnp.dot(
        x_ref[...], p_ref[...], preferred_element_type=jnp.float32
    ).astype(o_ref.dtype)


def energy_model_forward(features, weight, *, block_packed_rows=1024):
    """Pallas equivalent of EnergyModel.forward: features @ W^T.

    features: (B, 8) float32 (or bfloat16)
    weight:   (1, 8)          (nn.Linear(8, 1, bias=False).weight)
    returns:  (B, 1) float32
    """
    B, D = features.shape
    assert D == D_IN, "EnergyModel expects 8 input features"
    assert weight.shape == (1, D_IN)

    # ---- pack to lane-dense (n_packed, 1024); pad only to a sublane-aligned ----
    # ---- packed-row count (<= 1023 extra zero rows, never a whole tile)      ----
    n_packed = -(-B // PACK)                       # ceil(B / 128)
    n_packed = ((n_packed + 7) // 8) * 8           # sublane-aligned (multiple of 8)
    B_pad = n_packed * PACK

    x = features
    if B_pad != B:
        x = jnp.pad(x, ((0, B_pad - B), (0, 0)))   # zero rows -> zero energies, dropped
    x_packed = x.reshape(n_packed, K)              # (n_packed, 1024)

    # ---- block-diagonal weight P (1024, 128): P[8*j + d, j] = w[d] ----
    # Built once in the wrapper; stays f32 for f32 features (no quantization).
    w = weight.reshape(D_IN).astype(jnp.float32)
    col = jnp.arange(K)
    P = jnp.where(
        (col[:, None] // D_IN) == jnp.arange(PACK)[None, :],
        w[col % D_IN][:, None],
        0.0,
    ).astype(x_packed.dtype)                       # (1024, 128)

    # ---- tile: multiple of 8 packed rows; default 1024 -> 4 MiB input block ----
    TP = max(8, (min(block_packed_rows, n_packed) // 8) * 8)
    grid = (pl.cdiv(n_packed, TP),)

    itemsize = jnp.dtype(x_packed.dtype).itemsize
    bytes_accessed = (n_packed * K + K * PACK) * itemsize + n_packed * PACK * 4

    out_packed = pl.pallas_call(
        energy_kernel,
        out_shape=jax.ShapeDtypeStruct((n_packed, PACK), jnp.float32),
        grid_spec=pltpu.PrefetchScalarGridSpec(
            num_scalar_prefetch=0,
            grid=grid,
            in_specs=[
                pl.BlockSpec((TP, K), lambda i: (i, 0)),
                # constant block index -> weight DMA'd once, resident across steps
                pl.BlockSpec((K, PACK), lambda i: (0, 0)),
            ],
            out_specs=pl.BlockSpec((TP, PACK), lambda i: (i, 0)),
        ),
        compiler_params=pltpu.CompilerParams(
            dimension_semantics=("parallel",),
            allow_input_fusion=[True, False],      # fuse pad/reshape into input DMA
        ),
        cost_estimate=pl.CostEstimate(
            flops=2 * B_pad * D_IN,
            transcendentals=0,
            bytes_accessed=int(bytes_accessed),
        ),
    )(x_packed, P)

    # (n_packed, 128) row-major == flat (B_pad,) energies -> (B, 1)
    return out_packed.reshape(B_pad, 1)[:B]


if __name__ == "__main__":
    key = jax.random.PRNGKey(0)
    k_feat1, k_feat2, k_w = jax.random.split(key, 3)

    # Deterministic init of nn.Linear(8, 1, bias=False).weight, shape (1, 8).
    bound = 1.0 / jnp.sqrt(jnp.float32(D_IN))
    weight = jax.random.uniform(
        k_w, (1, D_IN), minval=-bound, maxval=bound, dtype=jnp.float32
    )

    # Case 1: tiny batch -> single packed-row group, single grid step, row padding.
    B1 = 8
    feats1 = jax.random.normal(k_feat1, (B1, D_IN), dtype=jnp.float32)
    out1 = jax.block_until_ready(energy_model_forward(feats1, weight))
    ref1 = feats1 @ weight.T
    assert out1.shape == (B1, 1)
    assert jnp.allclose(out1, ref1, atol=1e-5, rtol=1e-5)

    # Case 2: non-aligned batch + small tile -> multi-step grid with a partial
    # last block (exercises row padding + boundary masking + resident weight).
    B2 = 2600
    feats2 = jax.random.normal(k_feat2, (B2, D_IN), dtype=jnp.float32)
    out2 = jax.block_until_ready(
        energy_model_forward(feats2, weight, block_packed_rows=16)
    )
    ref2 = feats2 @ weight.T
    assert out2.shape == (B2, 1)
    assert jnp.allclose(out2, ref2, atol=1e-5, rtol=1e-5)

    # TODO(synk): EnergyModel.backward (importance-weighted manual gradient) is a
    # training-time routine, not part of the forward pass; not implemented here.

    print("KERNEL_OK")
</pallas_src>

<mosaic_0001>
module attributes {stable_mosaic.version = 11 : i64} {
  func.func @energy_kernel(%arg0: i32, %arg1: memref<8x1024xf32, #tpu.memory_space<vmem>>, %arg2: memref<1024x128xf32, #tpu.memory_space<vmem>>, %arg3: memref<8x128xf32, #tpu.memory_space<vmem>>) attributes {dimension_semantics = [#tpu.dimension_semantics<parallel>], iteration_bounds = array<i64: 1>, scalar_prefetch = 0 : i64, scratch_operands = 0 : i64, tpu.core_type = #tpu.core_type<tc>, window_params = [{transform_indices = @transform_0, window_bounds = array<i64: 8, 1024>}, {pipeline_mode = #tpu.pipeline_mode<synchronous>, transform_indices = @transform_1, window_bounds = array<i64: 1024, 128>}, {transform_indices = @transform_2, window_bounds = array<i64: 8, 128>}]} {
    %c0 = arith.constant 0 : index
    %c0_0 = arith.constant 0 : index
    %0 = vector.load %arg1[%c0, %c0_0] : memref<8x1024xf32, #tpu.memory_space<vmem>>, vector<8x1024xf32>
    %c0_1 = arith.constant 0 : index
    %c0_2 = arith.constant 0 : index
    %1 = vector.load %arg2[%c0_1, %c0_2] : memref<1024x128xf32, #tpu.memory_space<vmem>>, vector<1024x128xf32>
    %cst = arith.constant dense<0.000000e+00> : vector<8x128xf32>
    %2 = tpu.matmul %0, %1, %cst {dimension_numbers = #tpu.dot_dimension_numbers<[1], [0], [0], [1], [0, 0, 1, 1], [], []>} : vector<8x1024xf32>, vector<1024x128xf32>, vector<8x128xf32> -> vector<8x128xf32>
    %c0_3 = arith.constant 0 : index
    %c0_4 = arith.constant 0 : index
    %3 = vector.load %arg3[%c0_3, %c0_4] : memref<8x128xf32, #tpu.memory_space<vmem>>, vector<8x128xf32>
    tpu.vector_store %arg3[%c0_3, %c0_4], %2 {strides = array<i32>} : memref<8x128xf32, #tpu.memory_space<vmem>>, vector<8x128xf32>,
    return
  }
  func.func @transform_0(%arg0: i32) -> (i32, i32) {
    %c0_i32 = arith.constant 0 : i32
    %c0_i32_0 = arith.constant 0 : i32
    return %arg0, %c0_i32 : i32, i32
  }
  func.func @transform_1(%arg0: i32) -> (i32, i32) {
    %c0_i32 = arith.constant 0 : i32
    %c0_i32_0 = arith.constant 0 : i32
    %c0_i32_1 = arith.constant 0 : i32
    return %c0_i32, %c0_i32_0 : i32, i32
  }
  func.func @transform_2(%arg0: i32) -> (i32, i32) {
    %c0_i32 = arith.constant 0 : i32
    %c0_i32_0 = arith.constant 0 : i32
    return %arg0, %c0_i32 : i32, i32
  }
}

</mosaic_0001>

<bundles_post_ra>
// kernel: tpu_custom_call.1
= control target key start
LH: loop header
LB: loop body
LE: loop exit
PB: predicated region body
PF: predicated region fallthrough
CT: control target
= control target key end

     0   :  { %7 = vsyncpa [#allocation3], 0  ;;  %s469_s0 = inlined_call_operand.hbm [shape: f32[8,1024], index: 0, kind: input, shape index: {}]   ;;  %s470_s1 = inlined_call_operand.hbm [shape: f32[1024,128], index: 1, kind: input, shape index: {}]   ;;  %s471_s2 = inlined_call_operand.hbm [shape: f32[8,128], index: 2, kind: output, shape index: {}]  }
   0x1   :  { %8 = vsyncpa [#allocation6], 0 }
   0x2   :  { %9 = vsyncpa [#allocation4], 0  ;;  %s15_s11 = sshll.u32 %s469_s0, 4  ;;  %s440_s12 = smov [#allocation2]   ;;  %s16_s11 = int_to_ptr.hbm [resolvable:$true] %s15_s11 }
   0x3   :  { %s17_s13 = sshll.u32 %s440_s12, 4  ;;  %s25_s16 = sshll.u32 %s470_s1, 4  ;;  %s18_s13 = int_to_ptr.vmem [resolvable:$true] %s17_s13  ;;  %s26_s16 = int_to_ptr.hbm [resolvable:$true] %s25_s16 }
   0x4   :  { %20 = dma.hbm_to_vmem [thread:$0]  %s16_s11, 1024, %s18_s13, [#allocation3]  }
   0x5   :  { %s441_s17 = smov [#allocation5]   ;;  %s442_s19 = smov 128  }
   0x6   :  { %s27_s18 = sshll.u32 %s441_s17, 4  ;;  %s443_s20 = smov 8   ;;  %s28_s18 = int_to_ptr.vmem [resolvable:$true] %s27_s18 }
   0x7   :  { %33 = dma.hbm_to_vmem [thread:$0]  %s26_s16, 16384, %s28_s18, [#allocation6], %s442_s19, %s442_s19, %s443_s20  }
   0x8   :  { %434 = dma.done.wait [#allocation3], 1024  }
   0x9   :  { %435 = vsyncadd [#allocation3], 4294966272 }
   0xa   :  { %436 = dma.done.wait [#allocation6], 16384  }
   0xb   :  { %437 = vsyncadd [#allocation6], 4294950912  ;;  %v65_v0 = vld [vmem:[#allocation5 + $0x78] sm:$0xff]  ;;  %v64_v2 = vld [vmem:[#allocation5 + $0x70] sm:$0xff]  ;;  %s444_s0 = smov [#allocation7]   ;;  %s346_s23 = sshll.u32 %s471_s2, 4  ;;  %s347_s23 = int_to_ptr.hbm [resolvable:$true] %s346_s23 }
   0xc   :  { %v97_v1 = vld [vmem:[#allocation5 + $0x178] sm:$0xff]  ;;  %178 = vmatpush.msra.mxu0 %v65_v0  ;;  %v96_v4 = vld [vmem:[#allocation5 + $0x170] sm:$0xff]  ;;  %v63_v6 = vld [vmem:[#allocation5 + $0x68] sm:$0xff]  ;;  %s344_s1 = sshll.u32 %s444_s0, 4  ;;  %s345_s1 = int_to_ptr.vmem [resolvable:$true] %s344_s1 }
   0xd   :  { %218 = vmatpush.msra.mxu2 %v97_v1  ;;  %v81_v3 = vld [vmem:[#allocation5 + $0xf8] sm:$0xff]  ;;  %v80_v7 = vld [vmem:[#allocation5 + $0xf0] sm:$0xff]  ;;  %v95_v8 = vld [vmem:[#allocation5 + $0x168] sm:$0xff] }
   0xe   :  { %v113_v5 = vld [vmem:[#allocation5 + $0x1f8] sm:$0xff]  ;;  %198 = vmatpush.msra.mxu1 %v81_v3  ;;  %179 = vmatpush.msra.mxu0 %v64_v2  ;;  %v112_v9 = vld [vmem:[#allocation5 + $0x1f0] sm:$0xff]  ;;  %v79_v10 = vld [vmem:[#allocation5 + $0xe8] sm:$0xff] }
   0xf   :  { %238 = vmatpush.msra.mxu3 %v113_v5  ;;  %219 = vmatpush.msra.mxu2 %v96_v4  ;;  %v62_v11 = vld [vmem:[#allocation5 + $0x60] sm:$0xff]  ;;  %v111_v13 = vld [vmem:[#allocation5 + $0x1e8] sm:$0xff]  ;;  %v61_v16 = vld [vmem:[#allocation5 + $0x58] sm:$0xff] }
  0x10   :  { %199 = vmatpush.msra.mxu1 %v80_v7  ;;  %v94_v12 = vld [vmem:[#allocation5 + $0x160] sm:$0xff]  ;;  %180 = vmatpush.msra.mxu0 %v63_v6  ;;  %v93_v17 = vld [vmem:[#allocation5 + $0x158] sm:$0xff]  ;;  %v60_v20 = vld [vmem:[#allocation5 + $0x50] sm:$0xff] }
  0x11   :  { %239 = vmatpush.msra.mxu3 %v112_v9  ;;  %220 = vmatpush.msra.mxu2 %v95_v8  ;;  %v78_v14 = vld [vmem:[#allocation5 + $0xe0] sm:$0xff]  ;;  %v77_v18 = vld [vmem:[#allocation5 + $0xd8] sm:$0xff]  ;;  %v92_v21 = vld [vmem:[#allocation5 + $0x150] sm:$0xff] }
  0x12   :  { %v110_v15 = vld [vmem:[#allocation5 + $0x1e0] sm:$0xff]  ;;  %200 = vmatpush.msra.mxu1 %v79_v10  ;;  %181 = vmatpush.msra.mxu0 %v62_v11  ;;  %v109_v19 = vld [vmem:[#allocation5 + $0x1d8] sm:$0xff]  ;;  %v76_v22 = vld [vmem:[#allocation5 + $0xd0] sm:$0xff] }
  0x13   :  { %240 = vmatpush.msra.mxu3 %v111_v13  ;;  %221 = vmatpush.msra.mxu2 %v94_v12  ;;  %v108_v23 = vld [vmem:[#allocation5 + $0x1d0] sm:$0xff]  ;;  %v59_v24 = vld [vmem:[#allocation5 + $0x48] sm:$0xff]  ;;  %v58_v28 = vld [vmem:[#allocation5 + $0x40] sm:$0xff] }
  0x14   :  { %201 = vmatpush.msra.mxu1 %v78_v14  ;;  %182 = vmatpush.msra.mxu0 %v61_v16  ;;  %v91_v25 = vld [vmem:[#allocation5 + $0x148] sm:$0xff]  ;;  %v90_v29 = vld [vmem:[#allocation5 + $0x140] sm:$0xff]  ;;  %v57_v32 = vld [vmem:[#allocation5 + $0x38] sm:$0xff] }
  0x15   :  { %241 = vmatpush.msra.mxu3 %v110_v15  ;;  %222 = vmatpush.msra.mxu2 %v93_v17  ;;  %v75_v26 = vld [vmem:[#allocation5 + $0xc8] sm:$0xff]  ;;  %v74_v30 = vld [vmem:[#allocation5 + $0xc0] sm:$0xff]  ;;  %v89_v33 = vld [vmem:[#allocation5 + $0x138] sm:$0xff] }
  0x16   :  { %202 = vmatpush.msra.mxu1 %v77_v18  ;;  %183 = vmatpush.msra.mxu0 %v60_v20  ;;  %v107_v27 = vld [vmem:[#allocation5 + $0x1c8] sm:$0xff]  ;;  %v106_v31 = vld [vmem:[#allocation5 + $0x1c0] sm:$0xff]  ;;  %v73_v34 = vld [vmem:[#allocation5 + $0xb8] sm:$0xff] }
  0x17   :  { %242 = vmatpush.msra.mxu3 %v109_v19  ;;  %223 = vmatpush.msra.mxu2 %v92_v21  ;;  %v105_v35 = vld [vmem:[#allocation5 + $0x1b8] sm:$0xff]  ;;  %v56_v36 = vld [vmem:[#allocation5 + $0x30] sm:$0xff]  ;;  %v55_v40 = vld [vmem:[#allocation5 + $0x28] sm:$0xff] }
  0x18   :  { %203 = vmatpush.msra.mxu1 %v76_v22  ;;  %184 = vmatpush.msra.mxu0 %v59_v24  ;;  %v88_v37 = vld [vmem:[#allocation5 + $0x130] sm:$0xff]  ;;  %v87_v41 = vld [vmem:[#allocation5 + $0x128] sm:$0xff]  ;;  %v54_v44 = vld [vmem:[#allocation5 + $0x20] sm:$0xff] }
  0x19   :  { %243 = vmatpush.msra.mxu3 %v108_v23  ;;  %224 = vmatpush.msra.mxu2 %v91_v25  ;;  %v72_v38 = vld [vmem:[#allocation5 + $0xb0] sm:$0xff]  ;;  %v71_v42 = vld [vmem:[#allocation5 + $0xa8] sm:$0xff]  ;;  %v86_v45 = vld [vmem:[#allocation5 + $0x120] sm:$0xff] }
  0x1a   :  { %204 = vmatpush.msra.mxu1 %v75_v26  ;;  %185 = vmatpush.msra.mxu0 %v58_v28  ;;  %v104_v39 = vld [vmem:[#allocation5 + $0x1b0] sm:$0xff]  ;;  %v103_v43 = vld [vmem:[#allocation5 + $0x1a8] sm:$0xff]  ;;  %v70_v46 = vld [vmem:[#allocation5 + $0xa0] sm:$0xff] }
  0x1b   :  { %244 = vmatpush.msra.mxu3 %v107_v27  ;;  %225 = vmatpush.msra.mxu2 %v90_v29  ;;  %v102_v47 = vld [vmem:[#allocation5 + $0x1a0] sm:$0xff]  ;;  %v53_v48 = vld [vmem:[#allocation5 + $0x18] sm:$0xff]  ;;  %v52_v52 = vld [vmem:[#allocation5 + $0x10] sm:$0xff] }
  0x1c   :  { %205 = vmatpush.msra.mxu1 %v74_v30  ;;  %186 = vmatpush.msra.mxu0 %v57_v32  ;;  %v85_v49 = vld [vmem:[#allocation5 + $0x118] sm:$0xff]  ;;  %v84_v53 = vld [vmem:[#allocation5 + $0x110] sm:$0xff]  ;;  %v51_v56 = vld [vmem:[#allocation5 + $0x8] sm:$0xff] }
  0x1d   :  { %245 = vmatpush.msra.mxu3 %v106_v31  ;;  %226 = vmatpush.msra.mxu2 %v89_v33  ;;  %v69_v50 = vld [vmem:[#allocation5 + $0x98] sm:$0xff]  ;;  %v68_v54 = vld [vmem:[#allocation5 + $0x90] sm:$0xff]  ;;  %v83_v57 = vld [vmem:[#allocation5 + $0x108] sm:$0xff] }
  0x1e   :  { %206 = vmatpush.msra.mxu1 %v73_v34  ;;  %187 = vmatpush.msra.mxu0 %v56_v36  ;;  %v101_v51 = vld [vmem:[#allocation5 + $0x198] sm:$0xff]  ;;  %v100_v55 = vld [vmem:[#allocation5 + $0x190] sm:$0xff]  ;;  %v67_v58 = vld [vmem:[#allocation5 + $0x88] sm:$0xff] }
  0x1f   :  { %246 = vmatpush.msra.mxu3 %v105_v35  ;;  %227 = vmatpush.msra.mxu2 %v88_v37  ;;  %v99_v59 = vld [vmem:[#allocation5 + $0x188] sm:$0xff]  ;;  %v50_v60 = vld [vmem:[#allocation5] sm:$0xff]  ;;  %v129_v62 = vld [vmem:[#allocation5 + $0x278] sm:$0xff] }
  0x20   :  { %207 = vmatpush.msra.mxu1 %v72_v38  ;;  %188 = vmatpush.msra.mxu0 %v55_v40  ;;  %v82_v61 = vld [vmem:[#allocation5 + $0x100] sm:$0xff]  ;;  %v161_v63 = vld [vmem:[#allocation5 + $0x378] sm:$0xff]  ;;  %v128_v2 = vld [vmem:[#allocation5 + $0x270] sm:$0xff] }
  0x21   :  { %247 = vmatpush.msra.mxu3 %v104_v39  ;;  %228 = vmatpush.msra.mxu2 %v87_v41  ;;  %v66_v0 = vld [vmem:[#allocation5 + $0x80] sm:$0xff]  ;;  %v145_v3 = vld [vmem:[#allocation5 + $0x2f8] sm:$0xff]  ;;  %v160_v4 = vld [vmem:[#allocation5 + $0x370] sm:$0xff] }
  0x22   :  { %208 = vmatpush.msra.mxu1 %v71_v42  ;;  %189 = vmatpush.msra.mxu0 %v54_v44  ;;  %v98_v1 = vld [vmem:[#allocation5 + $0x180] sm:$0xff]  ;;  %v177_v5 = vld [vmem:[#allocation5 + $0x3f8] sm:$0xff]  ;;  %v127_v6 = vld [vmem:[#allocation5 + $0x268] sm:$0xff] }
  0x23   :  { %248 = vmatpush.msra.mxu3 %v103_v43  ;;  %229 = vmatpush.msra.mxu2 %v86_v45  ;;  %v144_v7 = vld [vmem:[#allocation5 + $0x2f0] sm:$0xff]  ;;  %v159_v8 = vld [vmem:[#allocation5 + $0x368] sm:$0xff]  ;;  %v126_v10 = vld [vmem:[#allocation5 + $0x260] sm:$0xff] }
  0x24   :  { %209 = vmatpush.msra.mxu1 %v70_v46  ;;  %190 = vmatpush.msra.mxu0 %v53_v48  ;;  %v176_v9 = vld [vmem:[#allocation5 + $0x3f0] sm:$0xff]  ;;  %v143_v11 = vld [vmem:[#allocation5 + $0x2e8] sm:$0xff]  ;;  %v158_v12 = vld [vmem:[#allocation5 + $0x360] sm:$0xff] }
  0x25   :  { %249 = vmatpush.msra.mxu3 %v102_v47  ;;  %230 = vmatpush.msra.mxu2 %v85_v49  ;;  %v175_v13 = vld [vmem:[#allocation5 + $0x3e8] sm:$0xff]  ;;  %v125_v14 = vld [vmem:[#allocation5 + $0x258] sm:$0xff]  ;;  %v142_v15 = vld [vmem:[#allocation5 + $0x2e0] sm:$0xff] }
  0x26   :  { %210 = vmatpush.msra.mxu1 %v69_v50  ;;  %191 = vmatpush.msra.mxu0 %v52_v52  ;;  %v157_v16 = vld [vmem:[#allocation5 + $0x358] sm:$0xff]  ;;  %v174_v17 = vld [vmem:[#allocation5 + $0x3e0] sm:$0xff]  ;;  %v124_v18 = vld [vmem:[#allocation5 + $0x250] sm:$0xff] }
  0x27   :  { %250 = vmatpush.msra.mxu3 %v101_v51  ;;  %231 = vmatpush.msra.mxu2 %v84_v53  ;;  %v141_v19 = vld [vmem:[#allocation5 + $0x2d8] sm:$0xff]  ;;  %v156_v20 = vld [vmem:[#allocation5 + $0x350] sm:$0xff]  ;;  %v123_v22 = vld [vmem:[#allocation5 + $0x248] sm:$0xff] }
  0x28   :  { %211 = vmatpush.msra.mxu1 %v68_v54  ;;  %192 = vmatpush.msra.mxu0 %v51_v56  ;;  %v173_v21 = vld [vmem:[#allocation5 + $0x3d8] sm:$0xff]  ;;  %v140_v23 = vld [vmem:[#allocation5 + $0x2d0] sm:$0xff]  ;;  %v155_v24 = vld [vmem:[#allocation5 + $0x348] sm:$0xff] }
  0x29   :  { %251 = vmatpush.msra.mxu3 %v100_v55  ;;  %232 = vmatpush.msra.mxu2 %v83_v57  ;;  %v172_v25 = vld [vmem:[#allocation5 + $0x3d0] sm:$0xff]  ;;  %v122_v26 = vld [vmem:[#allocation5 + $0x240] sm:$0xff]  ;;  %v139_v27 = vld [vmem:[#allocation5 + $0x2c8] sm:$0xff] }
  0x2a   :  { %212 = vmatpush.msra.mxu1 %v67_v58  ;;  %193 = vmatpush.msra.mxu0 %v50_v60  ;;  %v154_v28 = vld [vmem:[#allocation5 + $0x340] sm:$0xff]  ;;  %v171_v29 = vld [vmem:[#allocation5 + $0x3c8] sm:$0xff]  ;;  %v121_v30 = vld [vmem:[#allocation5 + $0x238] sm:$0xff] }
  0x2b   :  { %252 = vmatpush.msra.mxu3 %v99_v59  ;;  %233 = vmatpush.msra.mxu2 %v82_v61  ;;  %v138_v31 = vld [vmem:[#allocation5 + $0x2c0] sm:$0xff]  ;;  %v153_v32 = vld [vmem:[#allocation5 + $0x338] sm:$0xff]  ;;  %v120_v34 = vld [vmem:[#allocation5 + $0x230] sm:$0xff] }
  0x2c   :  { %258 = vmatpush.msrb.mxu0 %v129_v62  ;;  %213 = vmatpush.msra.mxu1 %v66_v0  ;;  %v170_v33 = vld [vmem:[#allocation5 + $0x3c0] sm:$0xff]  ;;  %v137_v35 = vld [vmem:[#allocation5 + $0x2b8] sm:$0xff]  ;;  %v152_v36 = vld [vmem:[#allocation5 + $0x330] sm:$0xff] }
  0x2d   :  { %298 = vmatpush.msrb.mxu2 %v161_v63  ;;  %253 = vmatpush.msra.mxu3 %v98_v1  ;;  %v169_v37 = vld [vmem:[#allocation5 + $0x3b8] sm:$0xff]  ;;  %v119_v38 = vld [vmem:[#allocation5 + $0x228] sm:$0xff]  ;;  %v136_v39 = vld [vmem:[#allocation5 + $0x2b0] sm:$0xff] }
  0x2e   :  { %259 = vmatpush.msrb.mxu0 %v128_v2  ;;  %278 = vmatpush.msrb.mxu1 %v145_v3  ;;  %v151_v40 = vld [vmem:[#allocation5 + $0x328] sm:$0xff]  ;;  %v168_v41 = vld [vmem:[#allocation5 + $0x3b0] sm:$0xff]  ;;  %v118_v43 = vld [vmem:[#allocation5 + $0x220] sm:$0xff] }
  0x2f   :  { %299 = vmatpush.msrb.mxu2 %v160_v4  ;;  %318 = vmatpush.msrb.mxu3 %v177_v5  ;;  %v44_v42 = vld [vmem:[#allocation2 + $0x10] sm:$0xff]  ;;  %v135_v44 = vld [vmem:[#allocation5 + $0x2a8] sm:$0xff]  ;;  %v150_v45 = vld [vmem:[#allocation5 + $0x320] sm:$0xff] }
  0x30   :  { %260 = vmatpush.msrb.mxu0 %v127_v6  ;;  %279 = vmatpush.msrb.mxu1 %v144_v7  ;;  %v167_v46 = vld [vmem:[#allocation5 + $0x3a8] sm:$0xff]  ;;  %v42_v47 = vld [vmem:[#allocation2] sm:$0xff]  ;;  %v45_v48 = vld [vmem:[#allocation2 + $0x18] sm:$0xff] }
  0x31   :  { %300 = vmatpush.msrb.mxu2 %v159_v8  ;;  %319 = vmatpush.msrb.mxu3 %v176_v9  ;;  %v117_v49 = vld [vmem:[#allocation5 + $0x218] sm:$0xff]  ;;  %v134_v50 = vld [vmem:[#allocation5 + $0x2a0] sm:$0xff]  ;;  %v43_v53 = vld [vmem:[#allocation2 + $0x8] sm:$0xff] }
  0x32   :  { %261 = vmatpush.msrb.mxu0 %v126_v10  ;;  %280 = vmatpush.msrb.mxu1 %v143_v11  ;;  %v149_v51 = vld [vmem:[#allocation5 + $0x318] sm:$0xff]  ;;  %v166_v52 = vld [vmem:[#allocation5 + $0x3a0] sm:$0xff]  ;;  %v116_v54 = vld [vmem:[#allocation5 + $0x210] sm:$0xff] }
  0x33   :  { %301 = vmatpush.msrb.mxu2 %v158_v12  ;;  %320 = vmatpush.msrb.mxu3 %v175_v13  ;;  %v133_v55 = vld [vmem:[#allocation5 + $0x298] sm:$0xff]  ;;  %v148_v56 = vld [vmem:[#allocation5 + $0x310] sm:$0xff]  ;;  %v115_v58 = vld [vmem:[#allocation5 + $0x208] sm:$0xff] }
  0x34   :  { %262 = vmatpush.msrb.mxu0 %v125_v14  ;;  %281 = vmatpush.msrb.mxu1 %v142_v15  ;;  %v165_v57 = vld [vmem:[#allocation5 + $0x398] sm:$0xff]  ;;  %v132_v59 = vld [vmem:[#allocation5 + $0x290] sm:$0xff]  ;;  %v147_v60 = vld [vmem:[#allocation5 + $0x308] sm:$0xff] }
  0x35   :  { %302 = vmatpush.msrb.mxu2 %v157_v16  ;;  %321 = vmatpush.msrb.mxu3 %v174_v17  ;;  %v164_v61 = vld [vmem:[#allocation5 + $0x390] sm:$0xff]  ;;  %v114_v62 = vld [vmem:[#allocation5 + $0x200] sm:$0xff]  ;;  %v131_v63 = vld [vmem:[#allocation5 + $0x288] sm:$0xff] }
  0x36   :  { %263 = vmatpush.msrb.mxu0 %v124_v18  ;;  %282 = vmatpush.msrb.mxu1 %v141_v19  ;;  %v146_v0 = vld [vmem:[#allocation5 + $0x300] sm:$0xff]  ;;  %v163_v1 = vld [vmem:[#allocation5 + $0x388] sm:$0xff]  ;;  %v48_v3 = vld [vmem:[#allocation2 + $0x30] sm:$0xff] }
  0x37   :  { %303 = vmatpush.msrb.mxu2 %v156_v20  ;;  %322 = vmatpush.msrb.mxu3 %v173_v21  ;;  %v46_v2 = vld [vmem:[#allocation2 + $0x20] sm:$0xff]  ;;  %v47_v6 = vld [vmem:[#allocation2 + $0x28] sm:$0xff]  ;;  %v49_v7 = vld [vmem:[#allocation2 + $0x38] sm:$0xff] }
  0x38   :  { %264 = vmatpush.msrb.mxu0 %v123_v22  ;;  %283 = vmatpush.msrb.mxu1 %v140_v23  ;;  %v130_v4 = vld [vmem:[#allocation5 + $0x280] sm:$0xff] }
  0x39   :  { %304 = vmatpush.msrb.mxu2 %v155_v24  ;;  %323 = vmatpush.msrb.mxu3 %v172_v25  ;;  %v162_v5 = vld [vmem:[#allocation5 + $0x380] sm:$0xff] }
  0x3a   :  { %265 = vmatpush.msrb.mxu0 %v122_v26  ;;  %284 = vmatpush.msrb.mxu1 %v139_v27 }
  0x3b   :  { %305 = vmatpush.msrb.mxu2 %v154_v28  ;;  %324 = vmatpush.msrb.mxu3 %v171_v29 }
  0x3c   :  { %266 = vmatpush.msrb.mxu0 %v121_v30  ;;  %285 = vmatpush.msrb.mxu1 %v138_v31 }
  0x3d   :  { %306 = vmatpush.msrb.mxu2 %v153_v32  ;;  %325 = vmatpush.msrb.mxu3 %v170_v33 }
  0x3e   :  { %267 = vmatpush.msrb.mxu0 %v120_v34  ;;  %286 = vmatpush.msrb.mxu1 %v137_v35 }
  0x3f   :  { %307 = vmatpush.msrb.mxu2 %v152_v36  ;;  %326 = vmatpush.msrb.mxu3 %v169_v37 }
  0x40   :  { %268 = vmatpush.msrb.mxu0 %v119_v38  ;;  %287 = vmatpush.msrb.mxu1 %v136_v39 }
  0x41   :  { %308 = vmatpush.msrb.mxu2 %v151_v40  ;;  %327 = vmatpush.msrb.mxu3 %v168_v41 }
  0x42   :  { %234 = vmatmul.f32.vlgmr.msra.gmra.mxu2 %v44_v42  ;;  %269 = vmatpush.msrb.mxu0 %v118_v43 }
  0x43   :  { %288 = vmatpush.msrb.mxu1 %v135_v44  ;;  %309 = vmatpush.msrb.mxu2 %v150_v45 }
  0x44   :  { %328 = vmatpush.msrb.mxu3 %v167_v46  ;;  %194 = vmatmul.f32.vlgmr.msra.gmra.mxu0 %v42_v47 }
  0x45   :  { %254 = vmatmul.f32.vlgmr.msra.gmra.mxu3 %v45_v48  ;;  %270 = vmatpush.msrb.mxu0 %v117_v49 }
  0x46   :  { %289 = vmatpush.msrb.mxu1 %v134_v50  ;;  %310 = vmatpush.msrb.mxu2 %v149_v51 }
  0x47   :  { %329 = vmatpush.msrb.mxu3 %v166_v52  ;;  %214 = vmatmul.f32.vlgmr.msra.gmra.mxu1 %v43_v53 }
  0x48   :  { %271 = vmatpush.msrb.mxu0 %v116_v54  ;;  %290 = vmatpush.msrb.mxu1 %v133_v55 }
  0x49   :  { %311 = vmatpush.msrb.mxu2 %v148_v56  ;;  %330 = vmatpush.msrb.mxu3 %v165_v57 }
  0x4a   :  { %272 = vmatpush.msrb.mxu0 %v115_v58  ;;  %291 = vmatpush.msrb.mxu1 %v132_v59 }
  0x4b   :  { %312 = vmatpush.msrb.mxu2 %v147_v60  ;;  %331 = vmatpush.msrb.mxu3 %v164_v61 }
  0x4c   :  { %273 = vmatpush.msrb.mxu0 %v114_v62  ;;  %292 = vmatpush.msrb.mxu1 %v131_v63 }
  0x4d   :  { %313 = vmatpush.msrb.mxu2 %v146_v0  ;;  %332 = vmatpush.msrb.mxu3 %v163_v1 }
  0x4e   :  { %274 = vmatmul.f32.vlgmr.msrb.gmra.mxu0 %v46_v2  ;;  %314 = vmatmul.f32.vlgmr.msrb.gmra.mxu2 %v48_v3 }
  0x4f   :  { %293 = vmatpush.msrb.mxu1 %v130_v4  ;;  %333 = vmatpush.msrb.mxu3 %v162_v5 }
  0x50   :  { %294 = vmatmul.f32.vlgmr.msrb.gmra.mxu1 %v47_v6  ;;  %334 = vmatmul.f32.vlgmr.msrb.gmra.mxu3 %v49_v7 }
  0xc1   :  { %v195_v8 = vpop.f32.mrf.mxu0 }
  0xc4   :  { %v215_v9 = vpop.f32.mrf.mxu1 }
  0xc5   :  { %v216_v10 = vadd.f32 %v215_v9, %v195_v8  ;;  %v235_v11 = vpop.f32.mrf.mxu2 }
  0xc7   :  { %v236_v12 = vadd.f32 %v235_v11, %v216_v10 }
  0xc8   :  { %v255_v13 = vpop.f32.mrf.mxu3 }
  0xc9   :  { %v256_v14 = vadd.f32 %v255_v13, %v236_v12 }
  0xcb   :  { %v275_v15 = vpop.f32.mrf.mxu0 }
  0xcc   :  { %v276_v16 = vadd.f32 %v275_v15, %v256_v14 }
  0xcd   :  { %v295_v17 = vpop.f32.mrf.mxu1 }
  0xce   :  { %v296_v18 = vadd.f32 %v295_v17, %v276_v16 }
  0xd1   :  { %v315_v19 = vpop.f32.mrf.mxu2 }
  0xd2   :  { %v316_v20 = vadd.f32 %v315_v19, %v296_v18 }
  0xd3   :  { %v335_v21 = vpop.f32.mrf.mxu3 }
  0xd4   :  { %v336_v22 = vadd.f32 %v335_v21, %v316_v20 }
  0xd6   :  { %338 = vst [vmem:[#allocation7] sm:$0xff] %v336_v22 }
  0xd7   :  { %349 = dma.vmem_to_hbm [thread:$0]  %s345_s1, 128, %s347_s23, [#allocation4]  }
  0xd8   :  { %438 = dma.done.wait [#allocation4], 128  }
  0xd9   :  { %439 = vsyncadd [#allocation4], 4294967168 }
  0xda   :  { %354 = vsyncpa [#allocation3], 1 }
  0xdb   :  { %355 = vsyncpa [#allocation6], 1 }
  0xdc   :  { %356 = vsyncpa [#allocation4], 1 }

</bundles_post_ra>
